<compile_context>
chip_gen: v6e
topology: v6e:2x2x1
jax: 0.10.0
libtpu: 0.0.40
codegen_flags: <defaults>
</compile_context>

<pallas_src>
import functools
import math

import jax
import jax.numpy as jnp
from jax.experimental import pallas as pl
from jax.experimental.pallas import tpu as pltpu


def _round_up(x: int, m: int) -> int:
    return ((x + m - 1) // m) * m


_LANE = 128
_ROW_PACK = 16                        # bf16 vreg sublane pack
_RESIDENT_WEIGHT_BUDGET = 40 << 20    # per-group resident weights (v7x-safe)
_VMEM_LIMIT_FLOOR = 8 << 20
_VMEM_LIMIT_CEIL = 56 << 20           # stay well under v7x 64 MiB physical VMEM


def _fused_mlp_kernel(*refs, num_layers: int, relu_last: bool, compute_dtype):
    # refs = (x_ref, w0, b0, w1, b1, ..., w_{L-1}, b_{L-1}, o_ref)
    x_ref, o_ref = refs[0], refs[-1]
    h = x_ref[...].astype(compute_dtype)                 # cast in-kernel (no wrapper pass)
    for i in range(num_layers):
        w = refs[1 + 2 * i][...]                         # (K, N) compute_dtype
        b = refs[2 + 2 * i][...]                         # (1, N) f32
        y = jnp.dot(h, w, preferred_element_type=jnp.float32) + b   # MXU, f32 acc
        if i < num_layers - 1 or relu_last:
            h = jnp.maximum(y, 0.0).astype(compute_dtype)            # ReLU -> bf16
        else:
            h = y                                                     # final layer stays f32
    o_ref[...] = h.astype(o_ref.dtype)


def _choose_row_tiling(M: int, tile_cap: int):
    """(tile, grid): tile % 16 == 0, grid*tile >= M, balanced tiles, and
    grid >= 2 (even) when M >= 32 so v7x's second TC gets work (a second grid
    step is ~0.35us on the single-TC v5e/v6e — negligible)."""
    tile_cap = _round_up(max(tile_cap, _ROW_PACK), _ROW_PACK)
    grid = max(1, pl.cdiv(M, tile_cap))
    if M >= 2 * _ROW_PACK:
        grid = max(grid, 2)
        if grid % 2:
            grid += 1
    tile = _round_up(pl.cdiv(M, grid), _ROW_PACK)
    return tile, grid


def _plan_groups(params, budget_bytes: int):
    """Partition consecutive layers into groups whose resident weights fit."""
    groups, cur, cur_b = [], [], 0
    for idx, (w, b) in enumerate(params):
        nb = w.size * w.dtype.itemsize + b.size * b.dtype.itemsize
        if cur and cur_b + nb > budget_bytes:
            groups.append(cur)
            cur, cur_b = [], 0
        cur.append(idx)
        cur_b += nb
    if cur:
        groups.append(cur)
    return groups


def _run_group(x2d, params, tile, grid, *, final_group, out_dtype, compute_dtype):
    M, K = x2d.shape
    n_out = params[-1][0].shape[1]

    in_specs = [pl.BlockSpec((tile, K), lambda i: (i, 0))]      # row-tiled activations
    operands = [x2d]
    weight_bytes = 0
    flops = 0
    for w, b in params:
        in_specs.append(pl.BlockSpec(w.shape, lambda i: (0, 0)))  # VMEM-resident weight
        in_specs.append(pl.BlockSpec(b.shape, lambda i: (0, 0)))  # VMEM-resident bias
        operands.extend([w, b])
        weight_bytes += w.size * w.dtype.itemsize + b.size * b.dtype.itemsize
        flops += 2 * M * w.shape[0] * w.shape[1]

    max_width = max(max(w.shape[1] for w, _ in params), K)
    x_tile_bytes = tile * K * x2d.dtype.itemsize
    out_tile_bytes = tile * n_out * jnp.dtype(out_dtype).itemsize
    scratch_bytes = 4 * tile * max_width * 4                     # hidden f32 temporaries headroom
    vmem_limit = weight_bytes + 2 * (x_tile_bytes + out_tile_bytes) + scratch_bytes + (2 << 20)
    vmem_limit = int(min(max(vmem_limit, _VMEM_LIMIT_FLOOR), _VMEM_LIMIT_CEIL))

    bytes_accessed = (M * K * x2d.dtype.itemsize + weight_bytes
                      + M * n_out * jnp.dtype(out_dtype).itemsize)

    kernel = functools.partial(
        _fused_mlp_kernel,
        num_layers=len(params),
        relu_last=not final_group,        # group boundary inside the MLP -> ReLU applies
        compute_dtype=compute_dtype)

    return pl.pallas_call(
        kernel,
        out_shape=jax.ShapeDtypeStruct((M, n_out), out_dtype),
        grid=(grid,),
        in_specs=in_specs,
        out_specs=pl.BlockSpec((tile, n_out), lambda i: (i, 0)),
        compiler_params=pltpu.CompilerParams(
            dimension_semantics=("parallel",),       # megacore sharding on v7x
            vmem_limit_bytes=vmem_limit,
        ),
        cost_estimate=pl.CostEstimate(
            flops=flops, transcendentals=0, bytes_accessed=bytes_accessed),
    )(*operands)


def fused_mlp_forward(x2d, padded_params, *, tile_m=512, compute_dtype=jnp.bfloat16):
    """x2d: (M, input_dim), any float dtype, unpadded.  Returns (M, output_dim)
    in x2d.dtype.  padded_params follow the per-layer padding policy built in
    PallasMLP.__init__ (hidden dims lane-padded, first K / last N unpadded)."""
    M = x2d.shape[0]
    out_dtype = x2d.dtype
    tile, grid = _choose_row_tiling(M, tile_m)
    groups = _plan_groups(padded_params, _RESIDENT_WEIGHT_BUDGET)

    h = x2d
    for gi, group in enumerate(groups):
        final = gi == len(groups) - 1
        h = _run_group(
            h, [padded_params[i] for i in group], tile, grid,
            final_group=final,
            out_dtype=out_dtype if final else compute_dtype,   # bf16 between groups
            compute_dtype=compute_dtype)
    return h


class PallasMLP:
    """Mirror of the PyTorch MLP: num_layers Linear layers with ReLU between
    all but the last. Forward runs as (usually) one fused Pallas kernel."""

    def __init__(self, input_dim, hidden_dim, output_dim, num_layers, key,
                 compute_dtype=jnp.bfloat16, tile_m=512):
        self.num_layers = num_layers
        self.output_dim = output_dim
        self.compute_dtype = compute_dtype
        self.tile_m = tile_m

        h = [hidden_dim] * (num_layers - 1)
        dims = list(zip([input_dim] + h, h + [output_dim]))

        # Padding policy: hidden (intermediate) feature dims -> multiples of 128
        # (lane-dense loads/stores of the hidden activation); the first layer's
        # K (= input_dim) and the last layer's N (= output_dim) stay unpadded so
        # x needs no wrapper-side pad and the output stream carries no padding.
        pad_dims = [input_dim] + [_round_up(d, _LANE) for d in h] + [output_dim]

        self.params = []          # unpadded f32 (nn.Linear-equivalent reference)
        self.padded_params = []   # padded, bf16 weights + f32 biases
        for l, (n_in, n_out) in enumerate(dims):
            key, kw, kb = jax.random.split(key, 3)
            # Matches nn.Linear's uniform(-1/sqrt(in), 1/sqrt(in)) init range.
            bound = 1.0 / math.sqrt(n_in)
            w = jax.random.uniform(kw, (n_in, n_out), jnp.float32, -bound, bound)
            b = jax.random.uniform(kb, (n_out,), jnp.float32, -bound, bound)
            self.params.append((w, b))

            k_p, n_p = pad_dims[l], pad_dims[l + 1]
            w_pad = jnp.zeros((k_p, n_p), jnp.float32).at[:n_in, :n_out].set(w)
            b_pad = jnp.zeros((1, n_p), jnp.float32).at[0, :n_out].set(b)
            self.padded_params.append((w_pad.astype(compute_dtype), b_pad))

    def __call__(self, x):
        # x: (..., input_dim), same semantics as the PyTorch module.
        lead_shape = x.shape[:-1]
        x2d = x.reshape(-1, x.shape[-1])
        out = fused_mlp_forward(
            x2d, self.padded_params,
            tile_m=self.tile_m, compute_dtype=self.compute_dtype)
        return out.reshape(*lead_shape, self.output_dim)


def reference_mlp(x, params, num_layers):
    x2d = x.reshape(-1, x.shape[-1])
    for i, (w, b) in enumerate(params):
        y = x2d @ w + b
        x2d = jnp.maximum(y, 0.0) if i < num_layers - 1 else y
    return x2d.reshape(*x.shape[:-1], x2d.shape[-1])


if __name__ == "__main__":
    key = jax.random.PRNGKey(0)
    key, k_x, k_p = jax.random.split(key, 3)

    # Small shapes consistent with DETR's bbox-head usage: (batch, queries, dim).
    batch, num_queries = 2, 8
    input_dim, hidden_dim, output_dim, num_layers = 32, 32, 4, 3

    x = jax.random.normal(k_x, (batch, num_queries, input_dim), jnp.float32)

    mlp = PallasMLP(input_dim, hidden_dim, output_dim, num_layers, k_p)
    out = jax.block_until_ready(mlp(x))

    # Correctness check against a pure-JAX f32 reference. The kernel computes
    # matmuls in bf16 (f32 accumulation), so tolerance is relaxed accordingly.
    ref = reference_mlp(x, mlp.params, num_layers)
    assert out.shape == (batch, num_queries, output_dim)
    tol = 5e-2 if mlp.compute_dtype == jnp.bfloat16 else 1e-5
    assert jnp.allclose(out, ref, atol=tol, rtol=tol), (
        f"max abs diff = {jnp.max(jnp.abs(out - ref))}")

    print("KERNEL_OK")
</pallas_src>

<mosaic_0001>
module attributes {stable_mosaic.version = 11 : i64} {
  func.func @_fused_mlp_kernel(%arg0: i32, %arg1: memref<16x32xf32, #tpu.memory_space<vmem>>, %arg2: memref<32x128xbf16, #tpu.memory_space<vmem>>, %arg3: memref<1x128xf32, #tpu.memory_space<vmem>>, %arg4: memref<128x128xbf16, #tpu.memory_space<vmem>>, %arg5: memref<1x128xf32, #tpu.memory_space<vmem>>, %arg6: memref<128x4xbf16, #tpu.memory_space<vmem>>, %arg7: memref<1x4xf32, #tpu.memory_space<vmem>>, %arg8: memref<16x4xf32, #tpu.memory_space<vmem>>) attributes {dimension_semantics = [#tpu.dimension_semantics<parallel>], iteration_bounds = array<i64: 1>, scalar_prefetch = 0 : i64, scratch_operands = 0 : i64, tpu.core_type = #tpu.core_type<tc>, window_params = [{transform_indices = @transform_0, window_bounds = array<i64: 16, 32>}, {pipeline_mode = #tpu.pipeline_mode<synchronous>, transform_indices = @transform_1, window_bounds = array<i64: 32, 128>}, {pipeline_mode = #tpu.pipeline_mode<synchronous>, transform_indices = @transform_2, window_bounds = array<i64: 1, 128>}, {pipeline_mode = #tpu.pipeline_mode<synchronous>, transform_indices = @transform_3, window_bounds = array<i64: 128, 128>}, {pipeline_mode = #tpu.pipeline_mode<synchronous>, transform_indices = @transform_4, window_bounds = array<i64: 1, 128>}, {pipeline_mode = #tpu.pipeline_mode<synchronous>, transform_indices = @transform_5, window_bounds = array<i64: 128, 4>}, {pipeline_mode = #tpu.pipeline_mode<synchronous>, transform_indices = @transform_6, window_bounds = array<i64: 1, 4>}, {transform_indices = @transform_7, window_bounds = array<i64: 16, 4>}]} {
    %c0 = arith.constant 0 : index
    %c0_0 = arith.constant 0 : index
    %0 = vector.load %arg1[%c0, %c0_0] : memref<16x32xf32, #tpu.memory_space<vmem>>, vector<16x32xf32>
    %1 = arith.truncf %0 : vector<16x32xf32> to vector<16x32xbf16>
    %c0_1 = arith.constant 0 : index
    %c0_2 = arith.constant 0 : index
    %2 = vector.load %arg2[%c0_1, %c0_2] : memref<32x128xbf16, #tpu.memory_space<vmem>>, vector<32x128xbf16>
    %c0_3 = arith.constant 0 : index
    %c0_4 = arith.constant 0 : index
    %3 = vector.load %arg3[%c0_3, %c0_4] : memref<1x128xf32, #tpu.memory_space<vmem>>, vector<1x128xf32>
    %cst = arith.constant dense<0.000000e+00> : vector<16x128xf32>
    %4 = tpu.matmul %1, %2, %cst {dimension_numbers = #tpu.dot_dimension_numbers<[1], [0], [0], [1], [0, 0, 1, 1], [], []>} : vector<16x32xbf16>, vector<32x128xbf16>, vector<16x128xf32> -> vector<16x128xf32>
    %5 = vector.broadcast %3 : vector<1x128xf32> to vector<16x128xf32>
    %6 = arith.addf %4, %5 : vector<16x128xf32>
    %cst_5 = arith.constant 0.000000e+00 : f32
    %7 = vector.broadcast %cst_5 : f32 to vector<16x128xf32>
    %8 = arith.maximumf %6, %7 : vector<16x128xf32>
    %9 = arith.truncf %8 : vector<16x128xf32> to vector<16x128xbf16>
    %c0_6 = arith.constant 0 : index
    %c0_7 = arith.constant 0 : index
    %10 = vector.load %arg4[%c0_6, %c0_7] : memref<128x128xbf16, #tpu.memory_space<vmem>>, vector<128x128xbf16>
    %c0_8 = arith.constant 0 : index
    %c0_9 = arith.constant 0 : index
    %11 = vector.load %arg5[%c0_8, %c0_9] : memref<1x128xf32, #tpu.memory_space<vmem>>, vector<1x128xf32>
    %cst_10 = arith.constant dense<0.000000e+00> : vector<16x128xf32>
    %12 = tpu.matmul %9, %10, %cst_10 {dimension_numbers = #tpu.dot_dimension_numbers<[1], [0], [0], [1], [0, 0, 1, 1], [], []>} : vector<16x128xbf16>, vector<128x128xbf16>, vector<16x128xf32> -> vector<16x128xf32>
    %13 = vector.broadcast %11 : vector<1x128xf32> to vector<16x128xf32>
    %14 = arith.addf %12, %13 : vector<16x128xf32>
    %cst_11 = arith.constant 0.000000e+00 : f32
    %15 = vector.broadcast %cst_11 : f32 to vector<16x128xf32>
    %16 = arith.maximumf %14, %15 : vector<16x128xf32>
    %17 = arith.truncf %16 : vector<16x128xf32> to vector<16x128xbf16>
    %c0_12 = arith.constant 0 : index
    %c0_13 = arith.constant 0 : index
    %18 = vector.load %arg6[%c0_12, %c0_13] : memref<128x4xbf16, #tpu.memory_space<vmem>>, vector<128x4xbf16>
    %c0_14 = arith.constant 0 : index
    %c0_15 = arith.constant 0 : index
    %19 = vector.load %arg7[%c0_14, %c0_15] : memref<1x4xf32, #tpu.memory_space<vmem>>, vector<1x4xf32>
    %cst_16 = arith.constant dense<0.000000e+00> : vector<16x4xf32>
    %20 = tpu.matmul %17, %18, %cst_16 {dimension_numbers = #tpu.dot_dimension_numbers<[1], [0], [0], [1], [0, 0, 1, 1], [], []>} : vector<16x128xbf16>, vector<128x4xbf16>, vector<16x4xf32> -> vector<16x4xf32>
    %21 = vector.broadcast %19 : vector<1x4xf32> to vector<16x4xf32>
    %22 = arith.addf %20, %21 : vector<16x4xf32>
    %c0_17 = arith.constant 0 : index
    %c0_18 = arith.constant 0 : index
    %23 = vector.load %arg8[%c0_17, %c0_18] : memref<16x4xf32, #tpu.memory_space<vmem>>, vector<16x4xf32>
    tpu.vector_store %arg8[%c0_17, %c0_18], %22 {strides = array<i32>} : memref<16x4xf32, #tpu.memory_space<vmem>>, vector<16x4xf32>,
    return
  }
  func.func @transform_0(%arg0: i32) -> (i32, i32) {
    %c0_i32 = arith.constant 0 : i32
    %c0_i32_0 = arith.constant 0 : i32
    return %arg0, %c0_i32 : i32, i32
  }
  func.func @transform_1(%arg0: i32) -> (i32, i32) {
    %c0_i32 = arith.constant 0 : i32
    %c0_i32_0 = arith.constant 0 : i32
    %c0_i32_1 = arith.constant 0 : i32
    return %c0_i32, %c0_i32_0 : i32, i32
  }
  func.func @transform_2(%arg0: i32) -> (i32, i32) {
    %c0_i32 = arith.constant 0 : i32
    %c0_i32_0 = arith.constant 0 : i32
    %c0_i32_1 = arith.constant 0 : i32
    return %c0_i32, %c0_i32_0 : i32, i32
  }
  func.func @transform_3(%arg0: i32) -> (i32, i32) {
    %c0_i32 = arith.constant 0 : i32
    %c0_i32_0 = arith.constant 0 : i32
    %c0_i32_1 = arith.constant 0 : i32
    return %c0_i32, %c0_i32_0 : i32, i32
  }
  func.func @transform_4(%arg0: i32) -> (i32, i32) {
    %c0_i32 = arith.constant 0 : i32
    %c0_i32_0 = arith.constant 0 : i32
    %c0_i32_1 = arith.constant 0 : i32
    return %c0_i32, %c0_i32_0 : i32, i32
  }
  func.func @transform_5(%arg0: i32) -> (i32, i32) {
    %c0_i32 = arith.constant 0 : i32
    %c0_i32_0 = arith.constant 0 : i32
    %c0_i32_1 = arith.constant 0 : i32
    return %c0_i32, %c0_i32_0 : i32, i32
  }
  func.func @transform_6(%arg0: i32) -> (i32, i32) {
    %c0_i32 = arith.constant 0 : i32
    %c0_i32_0 = arith.constant 0 : i32
    %c0_i32_1 = arith.constant 0 : i32
    return %c0_i32, %c0_i32_0 : i32, i32
  }
  func.func @transform_7(%arg0: i32) -> (i32, i32) {
    %c0_i32 = arith.constant 0 : i32
    %c0_i32_0 = arith.constant 0 : i32
    return %arg0, %c0_i32 : i32, i32
  }
}

</mosaic_0001>

<bundles_post_ra>
// kernel: tpu_custom_call.1
= control target key start
LH: loop header
LB: loop body
LE: loop exit
PB: predicated region body
PF: predicated region fallthrough
CT: control target
= control target key end

     0   :  { %12 = vsyncpa [#allocation3], 0  ;;  %s667_s0 = inlined_call_operand.hbm [shape: f32[16,32], index: 0, kind: input, shape index: {}]   ;;  %s668_s1 = inlined_call_operand.hbm [shape: bf16[32,128], index: 1, kind: input, shape index: {}]   ;;  %s669_s2 = inlined_call_operand.vmem [shape: f32[1,128], index: 2, kind: input, shape index: {}]   ;;  %s670_s3 = inlined_call_operand.vmem [shape: bf16[128,128], index: 3, kind: input, shape index: {}]   ;;  %s671_s4 = inlined_call_operand.vmem [shape: f32[1,128], index: 4, kind: input, shape index: {}]   ;;  %s672_s5 = inlined_call_operand.vmem [shape: bf16[128,4], index: 5, kind: input, shape index: {}]   ;;  %s673_s6 = inlined_call_operand.vmem [shape: f32[1,4], index: 6, kind: input, shape index: {}]   ;;  %s674_s7 = inlined_call_operand.vmem [shape: f32[16,4], index: 7, kind: output, shape index: {}]  }
   0x1   :  { %13 = vsyncpa [#allocation5], 0  ;;  %s526_s24 = smov [#allocation2]  }
   0x2   :  { %s19_s25 = sshll.u32 %s526_s24, 4  ;;  %s20_s25 = int_to_ptr.vmem [resolvable:$true] %s19_s25 }
   0x3   :  { %s490_s26 = scalar_lea.vmem %s20_s25, 256  ;;  %p495_p1 = scmp.lt.s32.totalorder %s20_s25, %s20_s25 }
   0x4   :  { %p491_p0 = scmp.ne.s32.totalorder %s20_s25, %s490_s26  ;;  %p496_p2 = scmp.lt.s32.totalorder %s490_s26, %s490_s26 }
   0x6   :  { %p497_p3 = por %p496_p2, %p495_p1 }
   0x8   :  { %p498_p4 = pnand %p497_p3, %p491_p0 }
   0xa   :  { %501 = shalt.err (!%p498_p4)
}
   0xb   :  { %s527_s27 = smov 128   ;;  %s528_s28 = smov 8  }
   0xc   :  { %25 = dma.hbm_to_vmem [thread:$0]  %s667_s0, 256, %s20_s25, [#allocation3], %s527_s27, %s527_s27, %s528_s28  }
   0xd   :  { %s529_s8 = smov [#allocation4]  }
   0xe   :  { %s31_s9 = sshll.u32 %s529_s8, 4  ;;  %s32_s9 = int_to_ptr.vmem [resolvable:$true] %s31_s9 }
   0xf   :  { %s510_s10 = scalar_lea.vmem %s32_s9, 256  ;;  %p515_p6 = scmp.lt.s32.totalorder %s32_s9, %s32_s9 }
  0x10   :  { %p511_p5 = scmp.ne.s32.totalorder %s32_s9, %s510_s10  ;;  %p516_p7 = scmp.lt.s32.totalorder %s510_s10, %s510_s10 }
  0x12   :  { %p517_p8 = por %p516_p7, %p515_p6 }
  0x14   :  { %p518_p9 = pnand %p517_p8, %p511_p5 }
  0x16   :  { %521 = shalt.err (!%p518_p9)
}
  0x17   :  { %s530_s11 = smov 64   ;;  %s531_s12 = smov 4  }
  0x18   :  { %37 = dma.hbm_to_vmem [thread:$0]  %s668_s1, 256, %s32_s9, [#allocation5], %s530_s11, %s530_s11, %s531_s12  }
  0x19   :  { %522 = dma.done.wait [#allocation3], 256  }
  0x1a   :  { %523 = vsyncadd [#allocation3], 4294967040 }
  0x1b   :  { %524 = dma.done.wait [#allocation5], 256  }
  0x1c   :  { %525 = vsyncadd [#allocation5], 4294967040  ;;  %v532_v0 = vmov 0.0   ;;  %vm533_vm0 = vmmov 0   ;;  %v464_v1 = vld [vmem:[#allocation4 + $0x8] sm:$0xff]   ;;  %v465_v2 = vld [vmem:[#allocation4] sm:$0xff]  }
  0x1d   :  { %408 = vmatprep.subr.bf16.mxu0 %v532_v0  ;;  %412 = vmatprep.mubr.msk.bf16.mxu0 %vm533_vm0, %v532_v0  ;;  %v55_v3 = vld [vmem:[#allocation2] sm:$0xff]  ;;  %v56_v4 = vld [vmem:[#allocation2 + $0x8] sm:$0xff]  ;;  %v466_v5 = vld [vmem:[%s670_s3 + $0x38] sm:$0xff]   ;;  %vm81_vm1 = vcmask 261120   ;;  %vm356_vm2 = vcmask 31744  }
  0x1e   :  { %416 = vmatprep.subr.bf16.mxu1 %v532_v0  ;;  %432 = vmatprep.mubr.msk.bf16.mxu1 %vm533_vm0, %v532_v0  ;;  %v57_v6 = vpack.c.bf16 %v56_v4, %v55_v3  ;;  %v467_v7 = vld [vmem:[%s670_s3 + $0x30] sm:$0xff]   ;;  %v468_v8 = vld [vmem:[%s670_s3 + $0x28] sm:$0xff]   ;;  %v469_v9 = vld [vmem:[%s670_s3 + $0x20] sm:$0xff]  }
  0x1f   :  { %409 = vmatpush3.bf16.msra.mxu0 %v464_v1  ;;  %417 = vmatpush3.bf16.msra.mxu1 %v466_v5  ;;  %v470_v10 = vld [vmem:[%s670_s3 + $0x18] sm:$0xff]   ;;  %v471_v11 = vld [vmem:[%s670_s3 + $0x10] sm:$0xff]   ;;  %v472_v12 = vld [vmem:[%s670_s3 + $0x8] sm:$0xff]  }
  0x20   :  { %410 = vmatprep.subr.bf16.mxu0 %v532_v0  ;;  %418 = vmatprep.subr.bf16.mxu1 %v532_v0  ;;  %v473_v13 = vld [vmem:[%s670_s3] sm:$0xff]   ;;  %v474_v14 = vld [vmem:[%s672_s5 + $0x38] sm:$0xff]   ;;  %v475_v15 = vld [vmem:[%s672_s5 + $0x30] sm:$0xff]  }
  0x21   :  { %v476_v16 = vld [vmem:[%s672_s5 + $0x28] sm:$0xff]   ;;  %v477_v17 = vld [vmem:[%s672_s5 + $0x20] sm:$0xff]   ;;  %v478_v18 = vld [vmem:[%s672_s5 + $0x18] sm:$0xff]  }
  0x22   :  { %v365_v19 = vld [vmem:[%s669_s2] ss:$0 sm:$0xff]  ;;  %v479_v29 = vld [vmem:[%s672_s5 + $0x10] sm:$0xff]   ;;  %v480_v30 = vld [vmem:[%s672_s5 + $0x8] sm:$0xff]  }
  0x23   :  { %411 = vmatpush3.bf16.msra.mxu0 %v465_v2  ;;  %419 = vmatpush3.bf16.msra.mxu1 %v467_v7  ;;  %v481_v31 = vld [vmem:[%s672_s5] sm:$0xff]  }
  0x24   :  { %436 = vmatprep.subr.bf16.mxu0 %v532_v0  ;;  %420 = vmatprep.subr.bf16.mxu1 %v532_v0  ;;  %v369_v32 = vld [vmem:[%s671_s4] ss:$0 sm:$0xff] }
  0x25   :  { %v378_v42 = vld [vmem:[%s673_s6] ss:$0 sm:$0xff] }
  0x26   :  { %413 = vmatmul.mubr.msk.bf16.vlgmr.msra.gmra.mxu0 %vm81_vm1, %v57_v6 }
  0x27   :  { %452 = vmatprep.mubr.msk.bf16.mxu0 %vm533_vm0, %v532_v0  ;;  %421 = vmatpush3.bf16.msra.mxu1 %v468_v8 }
  0x28   :  { %422 = vmatprep.subr.bf16.mxu1 %v532_v0  ;;  %437 = vmatpush3.bf16.msra.mxu0 %v474_v14 }
  0x29   :  { %438 = vmatprep.subr.bf16.mxu0 %v532_v0 }
  0x2b   :  { %423 = vmatpush3.bf16.msra.mxu1 %v469_v9 }
  0x2c   :  { %424 = vmatprep.subr.bf16.mxu1 %v532_v0  ;;  %439 = vmatpush3.bf16.msra.mxu0 %v475_v15 }
  0x2d   :  { %440 = vmatprep.subr.bf16.mxu0 %v532_v0 }
  0x2f   :  { %425 = vmatpush3.bf16.msra.mxu1 %v470_v10 }
  0x30   :  { %426 = vmatprep.subr.bf16.mxu1 %v532_v0  ;;  %441 = vmatpush3.bf16.msra.mxu0 %v476_v16 }
  0x31   :  { %442 = vmatprep.subr.bf16.mxu0 %v532_v0 }
  0x33   :  { %427 = vmatpush3.bf16.msra.mxu1 %v471_v11 }
  0x34   :  { %428 = vmatprep.subr.bf16.mxu1 %v532_v0  ;;  %443 = vmatpush3.bf16.msra.mxu0 %v477_v17 }
  0x35   :  { %444 = vmatprep.subr.bf16.mxu0 %v532_v0 }
  0x37   :  { %429 = vmatpush3.bf16.msra.mxu1 %v472_v12 }
  0x38   :  { %430 = vmatprep.subr.bf16.mxu1 %v532_v0  ;;  %445 = vmatpush3.bf16.msra.mxu0 %v478_v18 }
  0x39   :  { %446 = vmatprep.subr.bf16.mxu0 %v532_v0 }
  0x3b   :  { %431 = vmatpush3.bf16.msra.mxu1 %v473_v13 }
  0x3c   :  { %447 = vmatpush3.bf16.msra.mxu0 %v479_v29 }
  0x3d   :  { %448 = vmatprep.subr.bf16.mxu0 %v532_v0 }
  0x40   :  { %449 = vmatpush3.bf16.msra.mxu0 %v480_v30 }
  0x41   :  { %450 = vmatprep.subr.bf16.mxu0 %v532_v0 }
  0x44   :  { %451 = vmatpush3.bf16.msra.mxu0 %v481_v31 }
  0xe6   :  { %v119_v20 = vpop.f32.mrf.mxu0 }
  0xe7   :  { %v120_v22 = vadd.f32 %v365_v19, %v119_v20 }
  0xe8   :  { %v414_v21 = vpop.f32.mrf.mxu0 }
  0xe9   :  { %v126_v26 = vmax.f32 %v120_v22, 0.0 }
  0xea   :  { %v122_v23 = vpop.f32.mrf.mxu0 }
  0xeb   :  { %v123_v24 = vadd.f32 %v365_v19, %v122_v23 }
  0xec   :  { %v415_v25 = vpop.f32.mrf.mxu0 }
  0xed   :  { %v127_v27 = vmax.f32 %v123_v24, 0.0 }
  0xef   :  { %v128_v28 = vpack.c.bf16 %v127_v27, %v126_v26 }
  0xf1   :  { %433 = vmatmul.mubr.bf16.vlgmr.msra.gmra.mxu1 %v128_v28 }
 0x1b1   :  { %v234_v33 = vpop.f32.mrf.mxu1 }
 0x1b2   :  { %v235_v35 = vadd.f32 %v369_v32, %v234_v33 }
 0x1b3   :  { %v434_v34 = vpop.f32.mrf.mxu1 }
 0x1b4   :  { %v241_v39 = vmax.f32 %v235_v35, 0.0 }
 0x1b5   :  { %v237_v36 = vpop.f32.mrf.mxu1 }
 0x1b6   :  { %v238_v37 = vadd.f32 %v369_v32, %v237_v36 }
 0x1b7   :  { %v435_v38 = vpop.f32.mrf.mxu1 }
 0x1b8   :  { %v242_v40 = vmax.f32 %v238_v37, 0.0 }
 0x1ba   :  { %v243_v41 = vpack.c.bf16 %v242_v40, %v241_v39 }
 0x1bc   :  { %453 = vmatmul.mubr.bf16.vlgmr.msra.gmra.mxu0 %v243_v41 }
 0x27c   :  { %v349_v43 = vpop.f32.mrf.mxu0 }
 0x27d   :  { %v350_v44 = vadd.f32 %v378_v42, %v349_v43 }
 0x27e   :  { %v454_v45 = vpop.f32.mrf.mxu0 }
 0x27f   :  { %357 = vst.msk [vmem:[%s674_s7] sm:$0xff] %vm356_vm2, %v350_v44 }
 0x280   :  { %v352_v46 = vpop.f32.mrf.mxu0 }
 0x281   :  { %v353_v47 = vadd.f32 %v378_v42, %v352_v46 }
 0x282   :  { %v455_v48 = vpop.f32.mrf.mxu0 }
 0x283   :  { %358 = vst.msk [vmem:[%s674_s7 + $0x8] sm:$0xff] %vm356_vm2, %v353_v47 }
 0x284   :  { %363 = vsyncpa [#allocation3], 1 }
 0x285   :  { %364 = vsyncpa [#allocation5], 1 }

</bundles_post_ra>
